<compile_context>
chip_gen: v5e
topology: v5e:2x2
jax: 0.10.0
libtpu: 0.0.40
codegen_flags: <defaults>
</compile_context>

<pallas_src>
import functools

import jax
import jax.numpy as jnp
from jax.experimental import pallas as pl
from jax.experimental.pallas import tpu as pltpu


# ----------------------------------------------------------------------------
# Pallas kernel: single fused matmul + shift + ReLU (both branches) + add
# ----------------------------------------------------------------------------
def _gconv_kernel(p_ref, w_ref, shift_ref, o_ref, *, n_out):
    # p: (tm, K) bf16   w: (K, 2N) bf16   shift: (1, 2N) f32   o: (tm, N) f32
    y = jnp.dot(p_ref[...], w_ref[...], preferred_element_type=jnp.float32)
    y = jnp.maximum(y + shift_ref[...], 0.0)          # both branches' ReLU, f32
    # cols [0:N) = dense branch, cols [N:2N) = grouped branch
    o_ref[...] = (y[:, :n_out] + y[:, n_out:]).astype(o_ref.dtype)


# ----------------------------------------------------------------------------
# Parameter construction (deterministic, matches GConv.__init__ init scheme)
# ----------------------------------------------------------------------------
def init_gconv_params(key, in_channels, out_channels, k_size, eps=1e-5):
    kg, kd = jax.random.split(key)
    # nn.init.normal_(weight, std=0.01); bias = 0
    w_g = 0.01 * jax.random.normal(
        kg, (out_channels, in_channels, k_size, k_size), jnp.float32)
    w_grp = 0.01 * jax.random.normal(
        kd, (out_channels, in_channels // 2, k_size, k_size), jnp.float32)
    b_g = jnp.zeros((out_channels,), jnp.float32)
    b_grp = jnp.zeros((out_channels,), jnp.float32)
    # BatchNorm2d defaults (eval mode): gamma=1, beta=0, mean=0, var=1
    # TODO(synk): training-mode BN (batch statistics of the conv output) is not
    # reproduced; inference-mode running stats are folded into the weights.
    bn = dict(gamma=jnp.ones((out_channels,), jnp.float32),
              beta=jnp.zeros((out_channels,), jnp.float32),
              mean=jnp.zeros((out_channels,), jnp.float32),
              var=jnp.ones((out_channels,), jnp.float32),
              eps=eps)
    return dict(w_g=w_g, b_g=b_g, w_grp=w_grp, b_grp=b_grp,
                bn_g=dict(bn), bn_grp=dict(bn))


def _fold_bn(conv_bias, bn):
    scale = bn["gamma"] / jnp.sqrt(bn["var"] + bn["eps"])
    shift = bn["beta"] + scale * (conv_bias - bn["mean"])
    return scale, shift


# ----------------------------------------------------------------------------
# Wrapper: im2col + weight packing in plain JAX, fused matmul in Pallas
# ----------------------------------------------------------------------------
@functools.partial(jax.jit, static_argnames=("k", "tm"))
def gconv_forward(x, params, *, k, tm=512):
    B, Cin, H, W = x.shape
    N = params["w_g"].shape[0]          # Cout
    Ho, Wo = H // k, W // k
    M = B * Ho * Wo
    K = Cin * k * k
    Nh, Kh = N // 2, (Cin // 2) * k * k

    # --- M-tile selection: at least 128, multiple of 128 (MXU / lane / sublane
    #     aligned on v5e; also a multiple of 256 by default for v6e/v7x), but
    #     never larger than the 128-padded problem.
    tm = max(128, min(int(tm), pl.cdiv(M, 128) * 128))
    tm = pl.cdiv(tm, 128) * 128
    Mp = pl.cdiv(M, tm) * tm

    # --- im2col in bf16: (B,Cin,H,W) -> (Mp, K), patch ordering (Cin, kh, kw).
    #     cast + transpose + reshape + pad all fuse into one XLA producer
    #     fusion: a single HBM pass over x, writing half-width (bf16) patches.
    patches = (x.astype(jnp.bfloat16)
                 .reshape(B, Cin, Ho, k, Wo, k)
                 .transpose(0, 2, 4, 1, 3, 5)
                 .reshape(M, K))
    if Mp != M:
        patches = jnp.pad(patches, ((0, Mp - M), (0, 0)))

    # --- fold conv bias + BN into per-channel scale/shift; fold the scale into
    #     the weight columns so the kernel epilogue is just +shift, ReLU, add.
    scale_g, shift_g = _fold_bn(params["b_g"], params["bn_g"])
    scale_d, shift_d = _fold_bn(params["b_grp"], params["bn_grp"])

    # dense conv weight -> (K, N), scale folded into columns
    w_g_mat = params["w_g"].astype(jnp.float32).reshape(N, K).T * scale_g[None, :]

    # grouped conv weight -> block-diagonal (K, N), scale folded into columns
    w_grp = params["w_grp"].astype(jnp.float32)
    blk0 = w_grp[:Nh].reshape(Nh, Kh).T * scale_d[None, :Nh]     # (Kh, Nh)
    blk1 = w_grp[Nh:].reshape(Nh, Kh).T * scale_d[None, Nh:]     # (Kh, Nh)
    zeros = jnp.zeros((Kh, Nh), jnp.float32)
    w_grp_mat = jnp.concatenate(
        [jnp.concatenate([blk0, zeros], axis=1),
         jnp.concatenate([zeros, blk1], axis=1)], axis=0)        # (K, N)

    # fused weight (K, 2N): one MXU push per tile serves both branches
    w_fused = jnp.concatenate([w_g_mat, w_grp_mat], axis=1).astype(jnp.bfloat16)
    shift = jnp.concatenate([shift_g, shift_d]).reshape(1, 2 * N).astype(jnp.float32)

    kernel = functools.partial(_gconv_kernel, n_out=N)

    out_flat = pl.pallas_call(
        kernel,
        out_shape=jax.ShapeDtypeStruct((Mp, N), jnp.float32),
        grid_spec=pltpu.PrefetchScalarGridSpec(
            num_scalar_prefetch=0,
            grid=(Mp // tm,),
            in_specs=[
                pl.BlockSpec((tm, K), lambda i: (i, 0)),      # patches (bf16)
                pl.BlockSpec((K, 2 * N), lambda i: (0, 0)),   # fused weight
                pl.BlockSpec((1, 2 * N), lambda i: (0, 0)),   # folded shift
            ],
            # NOTE on lane density: for Cout that is a multiple of 128 this
            # block is already lane-dense.  For tiny Cout a (tm*N//128, 128)
            # lane-packed store would need an in-kernel narrow->wide relayout
            # that Mosaic may refuse to lower, so the straightforward (tm, N)
            # block (contiguous per-block HBM writeback) is kept.
            out_specs=pl.BlockSpec((tm, N), lambda i: (i, 0)),
        ),
        compiler_params=pltpu.CompilerParams(
            dimension_semantics=("parallel",),       # shard M over TCs (v7x)
            vmem_limit_bytes=32 * 1024 * 1024,       # explicit, v7x-safe budget
        ),
    )(patches, w_fused, shift)

    # Module contract is NCHW (PyTorch).  This transpose could be skipped if
    # the consumer accepted NHWC directly.
    out = out_flat[:M].reshape(B, Ho, Wo, N).transpose(0, 3, 1, 2)
    return out


# ----------------------------------------------------------------------------
# Pure-JAX reference (lax convolutions) for correctness checking
# ----------------------------------------------------------------------------
def gconv_reference(x, params, *, k):
    dn = ("NCHW", "OIHW", "NCHW")

    def branch(w, b, bn, groups):
        y = jax.lax.conv_general_dilated(
            x.astype(jnp.float32), w.astype(jnp.float32),
            window_strides=(k, k), padding="VALID",
            dimension_numbers=dn, feature_group_count=groups,
            precision=jax.lax.Precision.HIGHEST)
        y = y + b[None, :, None, None]
        scale = bn["gamma"] / jnp.sqrt(bn["var"] + bn["eps"])
        shift = bn["beta"] - bn["mean"] * scale
        y = y * scale[None, :, None, None] + shift[None, :, None, None]
        return jnp.maximum(y, 0.0)

    yg = branch(params["w_g"], params["b_g"], params["bn_g"], 1)
    yd = branch(params["w_grp"], params["b_grp"], params["bn_grp"], 2)
    return yd + yg


if __name__ == "__main__":
    B, Cin, H, W = 2, 4, 16, 16
    Cout, k = 8, 4

    key = jax.random.PRNGKey(0)
    kx, kp = jax.random.split(key)
    x = jax.random.normal(kx, (B, Cin, H, W), jnp.float32)
    params = init_gconv_params(kp, Cin, Cout, k)

    out = gconv_forward(x, params, k=k)
    out = jax.block_until_ready(out)

    ref = gconv_reference(x, params, k=k)
    assert out.shape == (B, Cout, H // k, W // k), out.shape
    max_err = float(jnp.max(jnp.abs(out - ref)))
    # bf16 MXU operands vs f32 reference: element error is well below 1e-2 at
    # these magnitudes; structural bugs would show up as O(1e-1) errors.
    assert max_err < 1e-2, max_err

    print("KERNEL_OK")
</pallas_src>

<mosaic_0001>
module attributes {stable_mosaic.version = 11 : i64} {
  func.func @_gconv_kernel(%arg0: i32, %arg1: memref<128x64xbf16, #tpu.memory_space<vmem>>, %arg2: memref<64x16xbf16, #tpu.memory_space<vmem>>, %arg3: memref<1x16xf32, #tpu.memory_space<vmem>>, %arg4: memref<128x8xf32, #tpu.memory_space<vmem>>) attributes {dimension_semantics = [#tpu.dimension_semantics<parallel>], iteration_bounds = array<i64: 1>, scalar_prefetch = 0 : i64, scratch_operands = 0 : i64, tpu.core_type = #tpu.core_type<tc>, window_params = [{transform_indices = @transform_0, window_bounds = array<i64: 128, 64>}, {pipeline_mode = #tpu.pipeline_mode<synchronous>, transform_indices = @transform_1, window_bounds = array<i64: 64, 16>}, {pipeline_mode = #tpu.pipeline_mode<synchronous>, transform_indices = @transform_2, window_bounds = array<i64: 1, 16>}, {transform_indices = @transform_3, window_bounds = array<i64: 128, 8>}]} {
    %c0 = arith.constant 0 : index
    %c0_0 = arith.constant 0 : index
    %0 = vector.load %arg1[%c0, %c0_0] : memref<128x64xbf16, #tpu.memory_space<vmem>>, vector<128x64xbf16>
    %c0_1 = arith.constant 0 : index
    %c0_2 = arith.constant 0 : index
    %1 = vector.load %arg2[%c0_1, %c0_2] : memref<64x16xbf16, #tpu.memory_space<vmem>>, vector<64x16xbf16>
    %cst = arith.constant dense<0.000000e+00> : vector<128x16xf32>
    %2 = tpu.matmul %0, %1, %cst {dimension_numbers = #tpu.dot_dimension_numbers<[1], [0], [0], [1], [0, 0, 1, 1], [], []>} : vector<128x64xbf16>, vector<64x16xbf16>, vector<128x16xf32> -> vector<128x16xf32>
    %c0_3 = arith.constant 0 : index
    %c0_4 = arith.constant 0 : index
    %3 = vector.load %arg3[%c0_3, %c0_4] : memref<1x16xf32, #tpu.memory_space<vmem>>, vector<1x16xf32>
    %4 = vector.broadcast %3 : vector<1x16xf32> to vector<128x16xf32>
    %5 = arith.addf %2, %4 : vector<128x16xf32>
    %cst_5 = arith.constant 0.000000e+00 : f32
    %6 = vector.broadcast %cst_5 : f32 to vector<128x16xf32>
    %7 = arith.maximumf %5, %6 : vector<128x16xf32>
    %8 = vector.extract_strided_slice %7 {offsets = [0, 0], sizes = [128, 8], strides = [1, 1]} : vector<128x16xf32> to vector<128x8xf32>
    %9 = vector.extract_strided_slice %7 {offsets = [0, 8], sizes = [128, 8], strides = [1, 1]} : vector<128x16xf32> to vector<128x8xf32>
    %10 = arith.addf %8, %9 : vector<128x8xf32>
    %c0_6 = arith.constant 0 : index
    %c0_7 = arith.constant 0 : index
    %11 = vector.load %arg4[%c0_6, %c0_7] : memref<128x8xf32, #tpu.memory_space<vmem>>, vector<128x8xf32>
    tpu.vector_store %arg4[%c0_6, %c0_7], %10 {strides = array<i32>} : memref<128x8xf32, #tpu.memory_space<vmem>>, vector<128x8xf32>,
    return
  }
  func.func @transform_0(%arg0: i32) -> (i32, i32) {
    %c0_i32 = arith.constant 0 : i32
    %c0_i32_0 = arith.constant 0 : i32
    return %arg0, %c0_i32 : i32, i32
  }
  func.func @transform_1(%arg0: i32) -> (i32, i32) {
    %c0_i32 = arith.constant 0 : i32
    %c0_i32_0 = arith.constant 0 : i32
    %c0_i32_1 = arith.constant 0 : i32
    return %c0_i32, %c0_i32_0 : i32, i32
  }
  func.func @transform_2(%arg0: i32) -> (i32, i32) {
    %c0_i32 = arith.constant 0 : i32
    %c0_i32_0 = arith.constant 0 : i32
    %c0_i32_1 = arith.constant 0 : i32
    return %c0_i32, %c0_i32_0 : i32, i32
  }
  func.func @transform_3(%arg0: i32) -> (i32, i32) {
    %c0_i32 = arith.constant 0 : i32
    %c0_i32_0 = arith.constant 0 : i32
    return %arg0, %c0_i32 : i32, i32
  }
}

</mosaic_0001>

<bundles_post_ra>
// kernel: gconv_forward.1
= control target key start
LH: loop header
LB: loop body
LE: loop exit
PB: predicated region body
PF: predicated region fallthrough
CT: control target
= control target key end

     0   :  { %vm107_vm0 = vcmask 523264   ;;  %vm277_vm1 = vcmask 64512   ;;  %s586_s1 = inlined_call_operand.vmem [shape: bf16[64,16], index: 1, kind: input, shape index: {}]   ;;  %s587_s2 = inlined_call_operand.vmem [shape: f32[1,16], index: 2, kind: input, shape index: {}]   ;;  %s588_s0 = inlined_call_operand.vmem [shape: bf16[128,64], index: 0, kind: input, shape index: {}]   ;;  %s589_s3 = inlined_call_operand.vmem [shape: f32[128,8], index: 3, kind: output, shape index: {}]  }
   0x1   :  { %v365_v0 = vld [vmem:[%s586_s1 + $0x18] sm:$0xff]  ;;  %v364_v1 = vld [vmem:[%s586_s1 + $0x10] sm:$0xff]  ;;  %v363_v2 = vld [vmem:[%s586_s1 + $0x8] sm:$0xff] }
   0x2   :  { %136 = vmatpush.bf16.msra.mxu0 %v365_v0  ;;  %366 = vmatpush.bf16.msra.mxu1 %v365_v0  ;;  %v362_v3 = vld [vmem:[%s586_s1] sm:$0xff]  ;;  %v356_v5 = vld [vmem:[%s588_s0 + $0x10] sm:$0xff]  ;;  %v355_v8 = vld [vmem:[%s588_s0 + $0x8] sm:$0xff] }
   0x3   :  { %367 = vmatpush.bf16.msra.mxu2 %v365_v0  ;;  %368 = vmatpush.bf16.msra.mxu3 %v365_v0  ;;  %v354_v4 = vld [vmem:[%s588_s0] sm:$0xff]  ;;  %v360_v7 = vld [vmem:[%s588_s0 + $0x30] sm:$0xff]  ;;  %v357_v9 = vld [vmem:[%s588_s0 + $0x18] sm:$0xff] }
   0x4   :  { %v358_v6 = vld [vmem:[%s588_s0 + $0x20] sm:$0xff]  ;;  %v359_v10 = vld [vmem:[%s588_s0 + $0x28] sm:$0xff]  ;;  %v361_v11 = vld [vmem:[%s588_s0 + $0x38] sm:$0xff]  ;;  %s380_s0 = smov 120  }
   0x5   :  { %v448_v12 = vld [vmem:[%s587_s2] ss:$0 sm:$0xff] }
   0x6   :  { %137 = vmatpush.bf16.msra.mxu0 %v364_v1  ;;  %369 = vmatpush.bf16.msra.mxu1 %v364_v1 }
   0x7   :  { %370 = vmatpush.bf16.msra.mxu2 %v364_v1  ;;  %371 = vmatpush.bf16.msra.mxu3 %v364_v1 }
   0xa   :  { %138 = vmatpush.bf16.msra.mxu0 %v363_v2  ;;  %372 = vmatpush.bf16.msra.mxu1 %v363_v2 }
   0xb   :  { %373 = vmatpush.bf16.msra.mxu2 %v363_v2  ;;  %374 = vmatpush.bf16.msra.mxu3 %v363_v2 }
   0xe   :  { %139 = vmatpush.bf16.msra.mxu0 %v362_v3  ;;  %375 = vmatpush.bf16.msra.mxu1 %v362_v3 }
   0xf   :  { %376 = vmatpush.bf16.msra.mxu2 %v362_v3  ;;  %377 = vmatpush.bf16.msra.mxu3 %v362_v3 }
  0x11   :  { %346 = vmatmul.msk.bf16.vlgmr.msra.gmra.mxu0 %vm107_vm0, %v354_v4  ;;  %348 = vmatmul.msk.bf16.vlgmr.msra.gmra.mxu1 %vm107_vm0, %v356_v5 }
  0x12   :  { %350 = vmatmul.msk.bf16.vlgmr.msra.gmra.mxu2 %vm107_vm0, %v358_v6  ;;  %352 = vmatmul.msk.bf16.vlgmr.msra.gmra.mxu3 %vm107_vm0, %v360_v7 }
  0x21   :  { %347 = vmatmul.msk.bf16.gmra.mxu0 %vm107_vm0, %v355_v8  ;;  %349 = vmatmul.msk.bf16.gmra.mxu1 %vm107_vm0, %v357_v9 }
  0x22   :  { %351 = vmatmul.msk.bf16.gmra.mxu2 %vm107_vm0, %v359_v10  ;;  %353 = vmatmul.msk.bf16.gmra.mxu3 %vm107_vm0, %v361_v11 }
  0x8e   :  { %v141_v13 = vpop.f32.mrf.mxu0  ;;  %v151_v14 = vpop.f32.mrf.mxu1 }
  0x8f   :  { %v451_v15 = vadd.f32 %v448_v12, %v141_v13  ;;  %v454_v16 = vadd.f32 %v448_v12, %v151_v14 }
  0x91   :  { %v181_v17 = vmax.f32 %v451_v15, 0.0  ;;  %v185_v18 = vmax.f32 %v454_v16, 0.0 }
  0x93   :  { %221 = vrot.lane.b32.xlu2 %v185_v18, %s380_s0  ;;  %213 = vrot.lane.b32.xlu0 %v181_v17, %s380_s0 }
  0x95   :  { %v161_v19 = vpop.f32.mrf.mxu2  ;;  %v171_v20 = vpop.f32.mrf.mxu3 }
  0x96   :  { %v162_v21 = vadd.f32 %v448_v12, %v161_v19  ;;  %v143_v22 = vpop.f32.mrf.mxu0  ;;  %v466_v23 = vadd.f32 %v448_v12, %v171_v20  ;;  %v153_v26 = vpop.f32.mrf.mxu1 }
  0x97   :  { %v154_v27 = vadd.f32 %v448_v12, %v153_v26  ;;  %v475_v29 = vadd.f32 %v448_v12, %v143_v22 }
  0x98   :  { %v189_v24 = vmax.f32 %v162_v21, 0.0  ;;  %v193_v25 = vmax.f32 %v466_v23, 0.0 }
  0x99   :  { %v186_v32 = vmax.f32 %v154_v27, 0.0  ;;  %v182_v35 = vmax.f32 %v475_v29, 0.0 }
  0x9b   :  { %229 = vrot.lane.b32.xlu2 %v189_v24, %s380_s0  ;;  %237 = vrot.lane.b32.xlu0 %v193_v25, %s380_s0 }
  0x9d   :  { %v163_v28 = vpop.f32.mrf.mxu2  ;;  %v173_v33 = vpop.f32.mrf.mxu3 }
  0x9e   :  { %v146_v30 = vpop.f32.mrf.mxu0  ;;  %v488_v37 = vadd.f32 %v448_v12, %v163_v28  ;;  %v156_v41 = vpop.f32.mrf.mxu1  ;;  %v174_v59 = vadd.f32 %v448_v12, %v173_v33 }
  0x9f   :  { %v478_v31 = vadd.f32 %v448_v12, %v146_v30  ;;  %v497_v44 = vadd.f32 %v448_v12, %v156_v41 }
  0xa0   :  { %v190_v42 = vmax.f32 %v488_v37, 0.0  ;;  %v194_v60 = vmax.f32 %v174_v59, 0.0 }
  0xa1   :  { %v183_v34 = vmax.f32 %v478_v31, 0.0  ;;  %v187_v48 = vmax.f32 %v497_v44, 0.0 }
  0xa3   :  { %223 = vrot.lane.b32.xlu2 %v186_v32, %s380_s0  ;;  %217 = vrot.lane.b32.xlu1 %v183_v34, %s380_s0 }
  0xa4   :  { %215 = vrot.lane.b32.xlu0 %v182_v35, %s380_s0 }
  0xa5   :  { %v166_v36 = vpop.f32.mrf.mxu2  ;;  %v176_v39 = vpop.f32.mrf.mxu3 }
  0xa6   :  { %v491_v38 = vadd.f32 %v448_v12, %v166_v36  ;;  %v148_v43 = vpop.f32.mrf.mxu0  ;;  %v158_v52 = vpop.f32.mrf.mxu1  ;;  %v177_v53 = vadd.f32 %v448_v12, %v176_v39 }
  0xa7   :  { %v149_v45 = vadd.f32 %v448_v12, %v148_v43  ;;  %v159_v55 = vadd.f32 %v448_v12, %v158_v52 }
  0xa8   :  { %v191_v40 = vmax.f32 %v491_v38, 0.0  ;;  %v195_v56 = vmax.f32 %v177_v53, 0.0 }
  0xa9   :  { %v184_v50 = vmax.f32 %v149_v45, 0.0  ;;  %v188_v58 = vmax.f32 %v159_v55, 0.0 }
  0xab   :  { %233 = vrot.lane.b32.xlu1 %v191_v40, %s380_s0 }
  0xac   :  { %231 = vrot.lane.b32.xlu0 %v190_v42, %s380_s0 }
  0xad   :  { %v168_v46 = vpop.f32.mrf.mxu2  ;;  %v178_v51 = vpop.f32.mrf.mxu3 }
  0xae   :  { %v169_v47 = vadd.f32 %v448_v12, %v168_v46  ;;  %v179_v54 = vadd.f32 %v448_v12, %v178_v51 }
  0xb0   :  { %v192_v49 = vmax.f32 %v169_v47, 0.0  ;;  %v196_v57 = vmax.f32 %v179_v54, 0.0 }
  0xb2   :  { %235 = vrot.lane.b32.xlu2 %v192_v49, %s380_s0 }
  0xb3   :  { %219 = vrot.lane.b32.xlu1 %v184_v50, %s380_s0 }
  0xb4   :  { %225 = vrot.lane.b32.xlu0 %v187_v48, %s380_s0 }
  0xba   :  { %241 = vrot.lane.b32.xlu2 %v195_v56, %s380_s0 }
  0xbb   :  { %227 = vrot.lane.b32.xlu1 %v188_v58, %s380_s0 }
  0xbc   :  { %243 = vrot.lane.b32.xlu0 %v196_v57, %s380_s0 }
  0xc3   :  { %239 = vrot.lane.b32.xlu1 %v194_v60, %s380_s0 }
  0xed   :  { %v222_v61 = vpop.permute.xlu2 %221 }
  0xee   :  { %v265_v62 = vadd.f32 %v222_v61, %v185_v18 }
  0xf0   :  { %282 = vst.msk [vmem:[%s589_s3 + $0x20] sm:$0xff] %vm277_vm1, %v265_v62 }
  0xf5   :  { %v230_v63 = vpop.permute.xlu2 %229 }
  0xf6   :  { %v269_v0 = vadd.f32 %v230_v63, %v189_v24 }
  0xf8   :  { %286 = vst.msk [vmem:[%s589_s3 + $0x40] sm:$0xff] %vm277_vm1, %v269_v0 }
  0xfd   :  { %v224_v1 = vpop.permute.xlu2 %223 }
  0xfe   :  { %v266_v2 = vadd.f32 %v224_v1, %v186_v32 }
 0x100   :  { %283 = vst.msk [vmem:[%s589_s3 + $0x28] sm:$0xff] %vm277_vm1, %v266_v2 }
 0x105   :  { %v214_v3 = vpop.permute.xlu0 %213 }
 0x106   :  { %v261_v4 = vadd.f32 %v214_v3, %v181_v17 }
 0x108   :  { %278 = vst.msk [vmem:[%s589_s3] sm:$0xff] %vm277_vm1, %v261_v4 }
 0x10c   :  { %v236_v5 = vpop.permute.xlu2 %235 }
 0x10d   :  { %v272_v6 = vadd.f32 %v236_v5, %v192_v49  ;;  %v238_v7 = vpop.permute.xlu0 %237 }
 0x10e   :  { %v273_v8 = vadd.f32 %v238_v7, %v193_v25 }
 0x10f   :  { %289 = vst.msk [vmem:[%s589_s3 + $0x58] sm:$0xff] %vm277_vm1, %v272_v6 }
 0x110   :  { %290 = vst.msk [vmem:[%s589_s3 + $0x60] sm:$0xff] %vm277_vm1, %v273_v8 }
 0x114   :  { %v242_v9 = vpop.permute.xlu2 %241 }
 0x115   :  { %v275_v10 = vadd.f32 %v242_v9, %v195_v56  ;;  %v218_v11 = vpop.permute.xlu1 %217 }
 0x116   :  { %v263_v12 = vadd.f32 %v218_v11, %v183_v34  ;;  %v216_v13 = vpop.permute.xlu0 %215 }
 0x117   :  { %292 = vst.msk [vmem:[%s589_s3 + $0x70] sm:$0xff] %vm277_vm1, %v275_v10  ;;  %v262_v14 = vadd.f32 %v216_v13, %v182_v35 }
 0x118   :  { %280 = vst.msk [vmem:[%s589_s3 + $0x10] sm:$0xff] %vm277_vm1, %v263_v12 }
 0x119   :  { %279 = vst.msk [vmem:[%s589_s3 + $0x8] sm:$0xff] %vm277_vm1, %v262_v14 }
 0x11d   :  { %v234_v15 = vpop.permute.xlu1 %233 }
 0x11e   :  { %v271_v16 = vadd.f32 %v234_v15, %v191_v40  ;;  %v232_v17 = vpop.permute.xlu0 %231 }
 0x11f   :  { %v270_v18 = vadd.f32 %v232_v17, %v190_v42 }
 0x120   :  { %288 = vst.msk [vmem:[%s589_s3 + $0x50] sm:$0xff] %vm277_vm1, %v271_v16 }
 0x121   :  { %287 = vst.msk [vmem:[%s589_s3 + $0x48] sm:$0xff] %vm277_vm1, %v270_v18 }
 0x125   :  { %v220_v19 = vpop.permute.xlu1 %219 }
 0x126   :  { %v264_v20 = vadd.f32 %v220_v19, %v184_v50  ;;  %v226_v21 = vpop.permute.xlu0 %225 }
 0x127   :  { %v267_v22 = vadd.f32 %v226_v21, %v187_v48 }
 0x128   :  { %281 = vst.msk [vmem:[%s589_s3 + $0x18] sm:$0xff] %vm277_vm1, %v264_v20 }
 0x129   :  { %284 = vst.msk [vmem:[%s589_s3 + $0x30] sm:$0xff] %vm277_vm1, %v267_v22 }
 0x12d   :  { %v228_v23 = vpop.permute.xlu1 %227 }
 0x12e   :  { %v268_v24 = vadd.f32 %v228_v23, %v188_v58  ;;  %v244_v25 = vpop.permute.xlu0 %243 }
 0x12f   :  { %v276_v26 = vadd.f32 %v244_v25, %v196_v57 }
 0x130   :  { %285 = vst.msk [vmem:[%s589_s3 + $0x38] sm:$0xff] %vm277_vm1, %v268_v24 }
 0x131   :  { %293 = vst.msk [vmem:[%s589_s3 + $0x78] sm:$0xff] %vm277_vm1, %v276_v26 }
 0x135   :  { %v240_v27 = vpop.permute.xlu1 %239 }
 0x136   :  { %v274_v28 = vadd.f32 %v240_v27, %v194_v60 }
 0x138   :  { %291 = vst.msk [vmem:[%s589_s3 + $0x68] sm:$0xff] %vm277_vm1, %v274_v28 }

</bundles_post_ra>
